<compile_context>
chip_gen: v7x
topology: tpu7x:2x2x1
jax: 0.10.0
libtpu: 0.0.40
codegen_flags: <defaults>
</compile_context>

<pallas_src>
import math

import jax
import jax.numpy as jnp
from jax.experimental import pallas as pl
from jax.experimental.pallas import tpu as pltpu


def _round_up(v, m):
    return ((v + m - 1) // m) * m


def gaussian_codebook_kernel(x_ref, cb_ref, o_ref):
    # x_ref:  (TM, D)   tile of flattened inputs
    # cb_ref: (D,  TN)  column tile of the codebook
    # o_ref:  (TM, TN)  mean squared distance per code
    x = x_ref[...]
    cb = cb_ref[...]
    d = x_ref.shape[-1]
    inv_d = 1.0 / float(d)

    # Cross term on the MXU, accumulated in f32.
    xc = jnp.dot(x, cb, preferred_element_type=jnp.float32)        # (TM, TN)

    # Norm terms in f32 (cheap VPU/XLU reduces).
    xf = x.astype(jnp.float32)
    cf = cb.astype(jnp.float32)
    x2 = jnp.sum(xf * xf, axis=-1, keepdims=True)                  # (TM, 1)
    c2 = jnp.sum(cf * cf, axis=0, keepdims=True)                   # (1, TN)

    # mean over D == (||x||^2 + ||c||^2 - 2 x.c) / D ; multiply by constant
    # (no divide), clamp tiny negatives from cancellation, cast only at store.
    out = (x2 + c2 - 2.0 * xc) * inv_d
    out = jnp.maximum(out, 0.0)
    o_ref[...] = out.astype(o_ref.dtype)


def gaussian_codebook_forward(x, codebook, *, tm=256, tn=256):
    """x: (B, T, in_dim); codebook: (in_dim, num_codes) -> (B, T, num_codes)."""
    B, T, D = x.shape
    Dc, N = codebook.shape
    assert Dc == D

    M = B * T
    x_flat = x.reshape(M, D)

    # Choose MXU-friendly tiles, shrinking for small problems, and pad so the
    # grid divides evenly. Sublane multiple of 16 keeps bf16 packing dense.
    tm = min(tm, _round_up(M, 16))
    tn = min(tn, _round_up(N, 128))
    M_pad = _round_up(M, tm)
    N_pad = _round_up(N, tn)

    if M_pad != M:
        x_flat = jnp.pad(x_flat, ((0, M_pad - M), (0, 0)))
    cb = codebook
    if N_pad != N:
        cb = jnp.pad(cb, ((0, 0), (0, N_pad - N)))

    out = pl.pallas_call(
        gaussian_codebook_kernel,
        out_shape=jax.ShapeDtypeStruct((M_pad, N_pad), x.dtype),
        grid_spec=pltpu.PrefetchScalarGridSpec(
            num_scalar_prefetch=0,
            grid=(M_pad // tm, N_pad // tn),
            in_specs=[
                pl.BlockSpec((tm, D), lambda i, j: (i, 0)),   # row tile of x
                pl.BlockSpec((D, tn), lambda i, j: (0, j)),   # code-column tile
            ],
            out_specs=pl.BlockSpec((tm, tn), lambda i, j: (i, j)),
        ),
        compiler_params=pltpu.CompilerParams(
            dimension_semantics=("parallel", "parallel")),
    )(x_flat, cb)

    out = out[:M, :N]
    return out.reshape(B, T, N)


def init_codebook(key, in_dim, num_codes, dtype=jnp.float32):
    # Mirrors torch.nn.init.kaiming_uniform_(codebook, a=sqrt(5)) on a 2-D
    # tensor: fan_in = num_codes (dim 1), gain = sqrt(2/(1+5)),
    # bound = gain*sqrt(3/fan_in).
    fan_in = num_codes
    gain = math.sqrt(2.0 / (1.0 + 5.0))
    bound = gain * math.sqrt(3.0 / fan_in)
    return jax.random.uniform(key, (in_dim, num_codes), dtype,
                              minval=-bound, maxval=bound)


if __name__ == "__main__":
    B, T, in_dim, num_codes = 2, 8, 32, 128

    key = jax.random.PRNGKey(0)
    kx, kc = jax.random.split(key)
    x = jax.random.normal(kx, (B, T, in_dim), dtype=jnp.float32)
    codebook = init_codebook(kc, in_dim, num_codes)

    out = gaussian_codebook_forward(x, codebook)
    out = jax.block_until_ready(out)

    # Reference check (plain JAX, same semantics as the torch forward).
    ref = jnp.mean((x[:, :, :, None] - codebook[None, None, :, :]) ** 2, axis=-2)
    assert out.shape == (B, T, num_codes)
    assert jnp.allclose(out, ref, atol=1e-4, rtol=1e-4)

    # Also exercise a non-aligned, larger shape to validate padding/tiling.
    B2, T2, D2, N2 = 3, 67, 48, 200
    k1, k2 = jax.random.split(kc)
    x2 = jax.random.normal(k1, (B2, T2, D2), dtype=jnp.float32)
    cb2 = init_codebook(k2, D2, N2)
    out2 = jax.block_until_ready(gaussian_codebook_forward(x2, cb2))
    ref2 = jnp.mean((x2[:, :, :, None] - cb2[None, None, :, :]) ** 2, axis=-2)
    assert out2.shape == (B2, T2, N2)
    assert jnp.allclose(out2, ref2, atol=1e-4, rtol=1e-4)

    print("KERNEL_OK")
</pallas_src>

<mosaic_0001>
module attributes {stable_mosaic.version = 11 : i64} {
  func.func @gaussian_codebook_kernel(%arg0: i32, %arg1: i32, %arg2: memref<16x32xf32, #tpu.memory_space<vmem>>, %arg3: memref<32x128xf32, #tpu.memory_space<vmem>>, %arg4: memref<16x128xf32, #tpu.memory_space<vmem>>) attributes {dimension_semantics = [#tpu.dimension_semantics<parallel>, #tpu.dimension_semantics<parallel>], iteration_bounds = array<i64: 1, 1>, scalar_prefetch = 0 : i64, scratch_operands = 0 : i64, tpu.core_type = #tpu.core_type<tc>, window_params = [{transform_indices = @transform_0, window_bounds = array<i64: 16, 32>}, {transform_indices = @transform_1, window_bounds = array<i64: 32, 128>}, {transform_indices = @transform_2, window_bounds = array<i64: 16, 128>}]} {
    %c0 = arith.constant 0 : index
    %c0_0 = arith.constant 0 : index
    %0 = vector.load %arg2[%c0, %c0_0] : memref<16x32xf32, #tpu.memory_space<vmem>>, vector<16x32xf32>
    %c0_1 = arith.constant 0 : index
    %c0_2 = arith.constant 0 : index
    %1 = vector.load %arg3[%c0_1, %c0_2] : memref<32x128xf32, #tpu.memory_space<vmem>>, vector<32x128xf32>
    %cst = arith.constant dense<0.000000e+00> : vector<16x128xf32>
    %2 = tpu.matmul %0, %1, %cst {dimension_numbers = #tpu.dot_dimension_numbers<[1], [0], [0], [1], [0, 0, 1, 1], [], []>} : vector<16x32xf32>, vector<32x128xf32>, vector<16x128xf32> -> vector<16x128xf32>
    %3 = arith.mulf %0, %0 : vector<16x32xf32>
    %cst_3 = arith.constant dense<0.000000e+00> : vector<16xf32>
    %4 = vector.multi_reduction <add>, %3, %cst_3 [1] : vector<16x32xf32> to vector<16xf32>
    %5 = vector.shape_cast %4 : vector<16xf32> to vector<16x1xf32>
    %6 = arith.mulf %1, %1 : vector<32x128xf32>
    %cst_4 = arith.constant dense<0.000000e+00> : vector<128xf32>
    %7 = vector.multi_reduction <add>, %6, %cst_4 [0] : vector<32x128xf32> to vector<128xf32>
    %8 = vector.shape_cast %7 : vector<128xf32> to vector<1x128xf32>
    %9 = vector.broadcast %5 : vector<16x1xf32> to vector<16x128xf32>
    %10 = vector.broadcast %8 : vector<1x128xf32> to vector<16x128xf32>
    %11 = arith.addf %9, %10 : vector<16x128xf32>
    %cst_5 = arith.constant 2.000000e+00 : f32
    %12 = vector.broadcast %cst_5 : f32 to vector<16x128xf32>
    %13 = arith.mulf %12, %2 : vector<16x128xf32>
    %14 = arith.subf %11, %13 : vector<16x128xf32>
    %cst_6 = arith.constant 3.125000e-02 : f32
    %15 = vector.broadcast %cst_6 : f32 to vector<16x128xf32>
    %16 = arith.mulf %14, %15 : vector<16x128xf32>
    %cst_7 = arith.constant 0.000000e+00 : f32
    %17 = vector.broadcast %cst_7 : f32 to vector<16x128xf32>
    %18 = arith.maximumf %16, %17 : vector<16x128xf32>
    %c0_8 = arith.constant 0 : index
    %c0_9 = arith.constant 0 : index
    %19 = vector.load %arg4[%c0_8, %c0_9] : memref<16x128xf32, #tpu.memory_space<vmem>>, vector<16x128xf32>
    tpu.vector_store %arg4[%c0_8, %c0_9], %18 {strides = array<i32>} : memref<16x128xf32, #tpu.memory_space<vmem>>, vector<16x128xf32>,
    return
  }
  func.func @transform_0(%arg0: i32, %arg1: i32) -> (i32, i32) {
    %c0_i32 = arith.constant 0 : i32
    %c0_i32_0 = arith.constant 0 : i32
    return %arg0, %c0_i32 : i32, i32
  }
  func.func @transform_1(%arg0: i32, %arg1: i32) -> (i32, i32) {
    %c0_i32 = arith.constant 0 : i32
    %c0_i32_0 = arith.constant 0 : i32
    return %c0_i32, %arg1 : i32, i32
  }
  func.func @transform_2(%arg0: i32, %arg1: i32) -> (i32, i32) {
    %c0_i32 = arith.constant 0 : i32
    return %arg0, %arg1 : i32, i32
  }
}

</mosaic_0001>

<bundles_post_ra>
// kernel: tpu_custom_call.1
= control target key start
LH: loop header
LB: loop body
LE: loop exit
PB: predicated region body
PF: predicated region fallthrough
CT: control target
= control target key end

     0   :  { %7 = vsyncpa [#allocation3], 0  ;;  %s352_s0 = inlined_call_operand.hbm [shape: f32[16,32], index: 0, kind: input, shape index: {}]   ;;  %s353_s1 = inlined_call_operand.hbm [shape: f32[32,128], index: 1, kind: input, shape index: {}]   ;;  %s354_s2 = inlined_call_operand.hbm [shape: f32[16,128], index: 2, kind: output, shape index: {}]  }
   0x1   :  { %8 = vsyncpa [#allocation6], 0 }
   0x2   :  { %9 = vsyncpa [#allocation4], 0  ;;  %s283_s9 = smov [#allocation2]   ;;  %s211_s13 = scalar_lea.hbm %s352_s0, 256 }
   0x3   :  { %s15_s10 = sshll.u32 %s283_s9, 4  ;;  %p212_p0 = scmp.ne.s32.totalorder %s352_s0, %s211_s13  ;;  %s16_s10 = int_to_ptr.vmem [resolvable:$true] %s15_s10 }
   0x4   :  { %p215_p1 = scmp.lt.u32.totalorder %s211_s13, %s352_s0 }
   0x6   :  { %p217_p2 = pnand %p215_p1, %p212_p0 }
   0x8   :  { %220 = shalt.err (!%p217_p2)
}
   0x9   :  { %s221_s18 = scalar_lea.vmem %s16_s10, 256  ;;  %p226_p4 = scmp.lt.s32.totalorder %s16_s10, %s16_s10 }
   0xa   :  { %p222_p3 = scmp.ne.s32.totalorder %s16_s10, %s221_s18  ;;  %p227_p5 = scmp.lt.s32.totalorder %s221_s18, %s221_s18 }
   0xc   :  { %p228_p6 = por %p227_p5, %p226_p4 }
   0xe   :  { %p229_p7 = pnand %p228_p6, %p222_p3 }
  0x10   :  { %232 = shalt.err (!%p229_p7)
}
  0x11   :  { %s284_s19 = smov 128   ;;  %s285_s20 = smov 8  }
  0x12   :  { %21 = dma.hbm_to_vmem [thread:$0]  %s352_s0, 256, %s16_s10, [#allocation3], %s284_s19, %s284_s19, %s285_s20  }
  0x13   :  { %s286_s23 = smov [#allocation5]   ;;  %s233_s27 = scalar_lea.hbm %s353_s1, 512 }
  0x14   :  { %s27_s24 = sshll.u32 %s286_s23, 4  ;;  %p234_p8 = scmp.ne.s32.totalorder %s353_s1, %s233_s27  ;;  %s28_s24 = int_to_ptr.vmem [resolvable:$true] %s27_s24 }
  0x15   :  { %p237_p9 = scmp.lt.u32.totalorder %s233_s27, %s353_s1 }
  0x17   :  { %p239_p10 = pnand %p237_p9, %p234_p8 }
  0x19   :  { %242 = shalt.err (!%p239_p10)
}
  0x1a   :  { %s243_s4 = scalar_lea.vmem %s28_s24, 512  ;;  %p248_p12 = scmp.lt.s32.totalorder %s28_s24, %s28_s24 }
  0x1b   :  { %p244_p11 = scmp.ne.s32.totalorder %s28_s24, %s243_s4  ;;  %p249_p13 = scmp.lt.s32.totalorder %s243_s4, %s243_s4 }
  0x1d   :  { %p250_p0 = por %p249_p13, %p248_p12 }
  0x1f   :  { %p251_p1 = pnand %p250_p0, %p244_p11 }
  0x21   :  { %254 = shalt.err (!%p251_p1)
}
  0x22   :  { %33 = dma.hbm_to_vmem [thread:$0]  %s353_s1, 512, %s28_s24, [#allocation6], %s284_s19, %s284_s19, %s285_s20  }
  0x23   :  { %277 = dma.done.wait [#allocation3], 256  }
  0x24   :  { %278 = vsyncadd [#allocation3], 4294967040 }
  0x25   :  { %279 = dma.done.wait [#allocation6], 512  }
  0x26   :  { %280 = vsyncadd [#allocation6], 4294966784  ;;  %vm46_vm0 = vcmask 261120   ;;  %v42_v0 = vld [vmem:[#allocation5] sm:$0xff]  ;;  %v43_v1 = vld [vmem:[#allocation5 + $0x8] sm:$0xff]  ;;  %s287_s1 = smov [#allocation7]  }
  0x27   :  { %v44_v2 = vld [vmem:[#allocation5 + $0x10] sm:$0xff]  ;;  %v198_v3 = vpack.c.bf16 %v43_v1, %v42_v0  ;;  %v136_v4 = vmul.f32 %v42_v0, %v42_v0  ;;  %v137_v5 = vmul.f32 %v43_v1, %v43_v1  ;;  %v45_v6 = vld [vmem:[#allocation5 + $0x18] sm:$0xff]  ;;  %s166_s6 = sshll.u32 %s287_s1, 4  ;;  %s167_s6 = int_to_ptr.vmem [resolvable:$true] %s166_s6 }
  0x28   :  { %v138_v7 = vmul.f32 %v44_v2, %v44_v2  ;;  %v40_v8 = vld [vmem:[#allocation2] sm:$0xff]  ;;  %v41_v9 = vld [vmem:[#allocation2 + $0x8] sm:$0xff]  ;;  %v202_v10 = vpack.c.bf16 %v45_v6, %v44_v2  ;;  %v139_v14 = vmul.f32 %v45_v6, %v45_v6  ;;  %s255_s7 = scalar_lea.vmem %s167_s6, 256  ;;  %p260_p3 = scmp.lt.s32.totalorder %s167_s6, %s167_s6 }
  0x29   :  { %195 = vmatprep.mubr.msk.f32.mxu0 %vm46_vm0, %v40_v8  ;;  %v128_v11 = vmul.f32 %v40_v8, %v40_v8  ;;  %v129_v12 = vmul.f32 %v41_v9, %v41_v9  ;;  %199 = vmatprep.subr.bf16.mxu0 %v198_v3  ;;  %v140_v13 = vadd.f32 %v137_v5, %v136_v4  ;;  %p256_p2 = scmp.ne.s32.totalorder %s167_s6, %s255_s7  ;;  %p261_p4 = scmp.lt.s32.totalorder %s255_s7, %s255_s7 }
  0x2a   :  { %201 = vmatpush3.bf16.msra.mxu0 %v198_v3 }
  0x2b   :  { %v130_v15 = vsel %vm46_vm0, %v128_v11, 0.0  ;;  %203 = vmatprep.subr.bf16.mxu0 %v202_v10  ;;  %v141_v16 = vadd.f32 %v140_v13, %v138_v7  ;;  %v133_v17 = vsel %vm46_vm0, %v129_v12, 0.0  ;;  %p262_p5 = por %p261_p4, %p260_p3 }
  0x2c   :  { %131 = vadd.xlane.f32.xlu0 %v130_v15 }
  0x2d   :  { %v142_v18 = vadd.f32 %v141_v16, %v139_v14  ;;  %p263_p6 = pnand %p262_p5, %p256_p2 }
  0x2e   :  { %205 = vmatpush3.bf16.msra.mxu0 %v202_v10 }
  0x2f   :  { %v143_v19 = vrot.slane %v142_v18, 4 }
  0x30   :  { %134 = vadd.xlane.f32.xlu0 %v133_v17 }
  0x31   :  { %196 = vmatmul.mubr.msk.f32.vlgmr.msra.gmra.mrb[0].mxu0 %vm46_vm0, %v41_v9  ;;  %v144_v20 = vadd.f32 %v143_v19, %v142_v18 }
  0x33   :  { %v145_v21 = vrot.slane %v144_v20, 2 }
  0x35   :  { %v146_v22 = vadd.f32 %v145_v21, %v144_v20 }
  0x37   :  { %v147_v24 = vrot.slane %v146_v22, 1 }
  0x39   :  { %v148_v26 = vadd.f32 %v147_v24, %v146_v22 }
  0xb9   :  { %v132_v23 = vpop.xlane.xlu0 %131 }
  0xba   :  { %v149_v31 = vadd.f32 %v148_v26, %v132_v23 }
  0xbd   :  { %v135_v25 = vpop.xlane.xlu0 %134 }
  0xbe   :  { %v150_v27 = vadd.f32 %v148_v26, %v135_v25 }
 0x104   :  { %v197_v28 = vpop.f32.mrb[0].mxu0 }
 0x105   :  { %v152_v29 = vmul.f32 2.0, %v197_v28  ;;  %v119_v30 = vpop.f32.mrb[1].mxu0 }
 0x106   :  { %v151_v32 = vmul.f32 2.0, %v119_v30 }
 0x107   :  { %v154_v33 = vsub.f32 %v150_v27, %v152_v29 }
 0x108   :  { %v153_v34 = vsub.f32 %v149_v31, %v151_v32 }
 0x109   :  { %v156_v35 = vmul.f32 0.03125, %v154_v33 }
 0x10a   :  { %v155_v36 = vmul.f32 0.03125, %v153_v34 }
 0x10b   :  { %v158_v37 = vmax.f32 %v156_v35, 0.0 }
 0x10c   :  { %v157_v38 = vmax.f32 %v155_v36, 0.0 }
 0x10d   :  { %160 = vst [vmem:[#allocation7 + $0x8] sm:$0xff] %v158_v37 }
 0x10e   :  { %159 = vst [vmem:[#allocation7] sm:$0xff] %v157_v38 }
 0x10f   :  { %266 = shalt.err (!%p263_p6)
}
 0x110   :  { %s267_s10 = scalar_lea.hbm %s354_s2, 256 }
 0x111   :  { %p268_p7 = scmp.ne.s32.totalorder %s354_s2, %s267_s10  ;;  %p271_p8 = scmp.lt.u32.totalorder %s267_s10, %s354_s2 }
 0x113   :  { %p273_p9 = pnand %p271_p8, %p268_p7 }
 0x115   :  { %276 = shalt.err (!%p273_p9)
}
 0x116   :  { %172 = dma.vmem_to_hbm [thread:$0]  %s167_s6, 256, %s354_s2, [#allocation4], %s284_s19, %s284_s19, %s285_s20  }
 0x117   :  { %281 = dma.done.wait [#allocation4], 256  }
 0x118   :  { %282 = vsyncadd [#allocation4], 4294967040 }
 0x119   :  { %176 = vsyncpa [#allocation3], 1 }
 0x11a   :  { %177 = vsyncpa [#allocation6], 1 }
 0x11b   :  { %178 = vsyncpa [#allocation4], 1 }

</bundles_post_ra>
